<compile_context>
chip_gen: v6e
topology: v6e:2x2x1
jax: 0.10.0
libtpu: 0.0.40
codegen_flags: <defaults>
</compile_context>

<pallas_src>
import jax
import jax.numpy as jnp
from jax import lax
from jax.experimental import pallas as pl
from jax.experimental.pallas import tpu as pltpu


def _pick_tile(dim, target, align):
    """Largest `align`-multiple tile <= target that evenly divides `dim`.

    Falls back to the full dimension, which is always a legal block shape.
    """
    if dim <= target:
        return dim
    t = (target // align) * align
    while t >= align:
        if dim % t == 0:
            return t
        t -= align
    return dim


def mlp_kernel(x_ref, w_ref, b_ref, o_ref, acc_ref):
    # x_ref:  [tm, tk]      activation tile
    # w_ref:  [tn, tk]      weight tile, PyTorch [H_out, H_in] layout
    # b_ref:  [1,  tn]      bias tile (consumed only in the epilogue)
    # o_ref:  [tm, tn]      output tile
    # acc_ref:[tm, tn] f32  accumulator, resident across the K grid axis
    k = pl.program_id(2)

    @pl.when(k == 0)
    def _():
        acc_ref[...] = jnp.zeros_like(acc_ref)

    # x @ W^T: contract the lane axis of both tiles (trans-B on the MXU).
    acc_ref[...] += lax.dot_general(
        x_ref[...], w_ref[...],
        dimension_numbers=(((1,), (1,)), ((), ())),
        preferred_element_type=jnp.float32,
    )

    @pl.when(k == pl.num_programs(2) - 1)
    def _():
        y = acc_ref[...] + b_ref[...].astype(jnp.float32)
        o_ref[...] = jnp.tanh(y).astype(o_ref.dtype)   # tanh -> EUP slot


def mlp_layer(features, weight, bias, *, tm=256, tn=512, tk=512):
    """features: [..., H_in]; weight: [H_out, H_in] (nn.Linear layout); bias: [H_out]."""
    lead = features.shape[:-1]
    H_in = features.shape[-1]
    H_out, H_in_w = weight.shape
    assert H_in == H_in_w and bias.shape == (H_out,)

    x = features.reshape(-1, H_in)
    B = x.shape[0]

    # Pad the row (M) axis to a sublane multiple only when M must be tiled,
    # so tile search always finds an aligned divisor.
    B_pad = B
    if B > tm and B % 8 != 0:
        B_pad = B + (-B) % 8
        x = jnp.pad(x, ((0, B_pad - B), (0, 0)))

    # Multiples of 128 on N/K (lane / MXU contraction), 8 on M; or full extent.
    tm_ = _pick_tile(B_pad, tm, 8)
    tn_ = _pick_tile(H_out, tn, 128)
    tk_ = _pick_tile(H_in, tk, 128)
    grid = (B_pad // tm_, H_out // tn_, H_in // tk_)

    b2 = bias.reshape(1, H_out)
    itemsize = jnp.dtype(features.dtype).itemsize

    out = pl.pallas_call(
        mlp_kernel,
        out_shape=jax.ShapeDtypeStruct((B_pad, H_out), features.dtype),
        grid_spec=pltpu.PrefetchScalarGridSpec(
            num_scalar_prefetch=0,
            grid=grid,
            in_specs=[
                pl.BlockSpec((tm_, tk_), lambda i, j, k: (i, k)),   # x
                pl.BlockSpec((tn_, tk_), lambda i, j, k: (j, k)),   # W (PyTorch layout)
                pl.BlockSpec((1, tn_), lambda i, j, k: (0, j)),     # bias (N-tiled only)
            ],
            out_specs=pl.BlockSpec((tm_, tn_), lambda i, j, k: (i, j)),
            scratch_shapes=[pltpu.VMEM((tm_, tn_), jnp.float32)],
        ),
        compiler_params=pltpu.CompilerParams(
            dimension_semantics=("parallel", "parallel", "arbitrary")),
        cost_estimate=pl.CostEstimate(
            flops=2 * B_pad * H_out * H_in,
            transcendentals=B_pad * H_out,
            bytes_accessed=(B_pad * H_in + H_out * H_in + H_out
                            + B_pad * H_out) * itemsize,
        ),
    )(x, weight, b2)

    if B_pad != B:
        out = out[:B]
    return out.reshape(*lead, H_out)


if __name__ == "__main__":
    key = jax.random.PRNGKey(0)
    k_x, k_w, k_b, k_x2, k_w2, k_b2, k_x3 = jax.random.split(key, 7)

    # 1) Small shapes consistent with the module (single VMEM block).
    batch, hidden = 8, 32
    features = jax.random.normal(k_x, (batch, hidden), dtype=jnp.float32)
    weight = jax.random.normal(k_w, (hidden, hidden), dtype=jnp.float32) * 0.02
    bias = jax.random.normal(k_b, (hidden,), dtype=jnp.float32) * 0.02
    out = jax.block_until_ready(mlp_layer(features, weight, bias))
    ref = jnp.tanh(features @ weight.T + bias)
    assert out.shape == (batch, hidden)
    assert jnp.allclose(out, ref, atol=1e-5, rtol=1e-5)

    # 2) Exercise the tiled accumulator/epilogue path (grid > 1 on N and K)
    #    plus leading-dim flattening, at still-small shapes via forced tiles.
    hidden2 = 256
    features2 = jax.random.normal(k_x2, (2, 4, hidden2), dtype=jnp.float32)
    weight2 = jax.random.normal(k_w2, (hidden2, hidden2), dtype=jnp.float32) * 0.02
    bias2 = jax.random.normal(k_b2, (hidden2,), dtype=jnp.float32) * 0.02
    out2 = jax.block_until_ready(
        mlp_layer(features2, weight2, bias2, tm=8, tn=128, tk=128))
    ref2 = jnp.tanh(features2 @ weight2.T + bias2)
    assert out2.shape == (2, 4, hidden2)
    assert jnp.allclose(out2, ref2, atol=1e-5, rtol=1e-5)

    # 3) Exercise the ragged-batch padding path (B > tm, B % 8 != 0).
    features3 = jax.random.normal(k_x3, (12, hidden2), dtype=jnp.float32)
    out3 = jax.block_until_ready(
        mlp_layer(features3, weight2, bias2, tm=8, tn=128, tk=128))
    ref3 = jnp.tanh(features3 @ weight2.T + bias2)
    assert out3.shape == (12, hidden2)
    assert jnp.allclose(out3, ref3, atol=1e-5, rtol=1e-5)

    print("KERNEL_OK")
</pallas_src>

<mosaic_0001>
module attributes {stable_mosaic.version = 11 : i64} {
  func.func @mlp_kernel(%arg0: i32, %arg1: i32, %arg2: i32, %arg3: memref<8x32xf32, #tpu.memory_space<vmem>>, %arg4: memref<32x32xf32, #tpu.memory_space<vmem>>, %arg5: memref<1x32xf32, #tpu.memory_space<vmem>>, %arg6: memref<8x32xf32, #tpu.memory_space<vmem>>, %arg7: memref<8x32xf32, #tpu.memory_space<vmem>>) attributes {dimension_semantics = [#tpu.dimension_semantics<parallel>, #tpu.dimension_semantics<parallel>, #tpu.dimension_semantics<arbitrary>], iteration_bounds = array<i64: 1, 1, 1>, scalar_prefetch = 0 : i64, scratch_operands = 1 : i64, tpu.core_type = #tpu.core_type<tc>, window_params = [{transform_indices = @transform_0, window_bounds = array<i64: 8, 32>}, {transform_indices = @transform_1, window_bounds = array<i64: 32, 32>}, {transform_indices = @transform_2, window_bounds = array<i64: 1, 32>}, {transform_indices = @transform_3, window_bounds = array<i64: 8, 32>}]} {
    %c0_i32 = arith.constant 0 : i32
    %0 = arith.cmpi eq, %arg2, %c0_i32 : i32
    %1 = arith.extui %0 : i1 to i32
    %c0_i32_0 = arith.constant 0 : i32
    %2 = arith.cmpi ne, %1, %c0_i32_0 : i32
    scf.if %2 {
      %cst_10 = arith.constant 0.000000e+00 : f32
      %12 = vector.broadcast %cst_10 : f32 to vector<8x32xf32>
      %c0_11 = arith.constant 0 : index
      %c0_12 = arith.constant 0 : index
      %13 = vector.load %arg7[%c0_11, %c0_12] : memref<8x32xf32, #tpu.memory_space<vmem>>, vector<8x32xf32>
      tpu.vector_store %arg7[%c0_11, %c0_12], %12 {strides = array<i32>} : memref<8x32xf32, #tpu.memory_space<vmem>>, vector<8x32xf32>,
    } else {
    }
    %c0 = arith.constant 0 : index
    %c0_1 = arith.constant 0 : index
    %3 = vector.load %arg7[%c0, %c0_1] : memref<8x32xf32, #tpu.memory_space<vmem>>, vector<8x32xf32>
    %c0_2 = arith.constant 0 : index
    %c0_3 = arith.constant 0 : index
    %4 = vector.load %arg3[%c0_2, %c0_3] : memref<8x32xf32, #tpu.memory_space<vmem>>, vector<8x32xf32>
    %c0_4 = arith.constant 0 : index
    %c0_5 = arith.constant 0 : index
    %5 = vector.load %arg4[%c0_4, %c0_5] : memref<32x32xf32, #tpu.memory_space<vmem>>, vector<32x32xf32>
    %cst = arith.constant dense<0.000000e+00> : vector<8x32xf32>
    %6 = tpu.matmul %4, %5, %cst {dimension_numbers = #tpu.dot_dimension_numbers<[1], [1], [0], [0], [0, 0, 1, 0], [], []>} : vector<8x32xf32>, vector<32x32xf32>, vector<8x32xf32> -> vector<8x32xf32>
    %7 = arith.addf %3, %6 : vector<8x32xf32>
    %c0_6 = arith.constant 0 : index
    %c0_7 = arith.constant 0 : index
    %8 = vector.load %arg7[%c0_6, %c0_7] : memref<8x32xf32, #tpu.memory_space<vmem>>, vector<8x32xf32>
    tpu.vector_store %arg7[%c0_6, %c0_7], %7 {strides = array<i32>} : memref<8x32xf32, #tpu.memory_space<vmem>>, vector<8x32xf32>,
    %c0_i32_8 = arith.constant 0 : i32
    %9 = arith.cmpi eq, %arg2, %c0_i32_8 : i32
    %10 = arith.extui %9 : i1 to i32
    %c0_i32_9 = arith.constant 0 : i32
    %11 = arith.cmpi ne, %10, %c0_i32_9 : i32
    scf.if %11 {
      %c0_10 = arith.constant 0 : index
      %c0_11 = arith.constant 0 : index
      %12 = vector.load %arg7[%c0_10, %c0_11] : memref<8x32xf32, #tpu.memory_space<vmem>>, vector<8x32xf32>
      %c0_12 = arith.constant 0 : index
      %c0_13 = arith.constant 0 : index
      %13 = vector.load %arg5[%c0_12, %c0_13] : memref<1x32xf32, #tpu.memory_space<vmem>>, vector<1x32xf32>
      %14 = vector.broadcast %13 : vector<1x32xf32> to vector<8x32xf32>
      %15 = arith.addf %12, %14 : vector<8x32xf32>
      %16 = math.tanh %15 : vector<8x32xf32>
      %c0_14 = arith.constant 0 : index
      %c0_15 = arith.constant 0 : index
      %17 = vector.load %arg6[%c0_14, %c0_15] : memref<8x32xf32, #tpu.memory_space<vmem>>, vector<8x32xf32>
      tpu.vector_store %arg6[%c0_14, %c0_15], %16 {strides = array<i32>} : memref<8x32xf32, #tpu.memory_space<vmem>>, vector<8x32xf32>,
    } else {
    }
    return
  }
  func.func @transform_0(%arg0: i32, %arg1: i32, %arg2: i32) -> (i32, i32) {
    %c0_i32 = arith.constant 0 : i32
    return %arg0, %arg2 : i32, i32
  }
  func.func @transform_1(%arg0: i32, %arg1: i32, %arg2: i32) -> (i32, i32) {
    %c0_i32 = arith.constant 0 : i32
    return %arg1, %arg2 : i32, i32
  }
  func.func @transform_2(%arg0: i32, %arg1: i32, %arg2: i32) -> (i32, i32) {
    %c0_i32 = arith.constant 0 : i32
    %c0_i32_0 = arith.constant 0 : i32
    return %c0_i32, %arg1 : i32, i32
  }
  func.func @transform_3(%arg0: i32, %arg1: i32, %arg2: i32) -> (i32, i32) {
    %c0_i32 = arith.constant 0 : i32
    return %arg0, %arg1 : i32, i32
  }
}

</mosaic_0001>

<bundles_post_ra>
// kernel: tpu_custom_call.1
= control target key start
LH: loop header
LB: loop body
LE: loop exit
PB: predicated region body
PF: predicated region fallthrough
CT: control target
= control target key end

     0   :  { %8 = vsyncpa [#allocation4], 0  ;;  %s315_s0 = inlined_call_operand.hbm [shape: f32[8,32], index: 0, kind: input, shape index: {}]   ;;  %s316_s1 = inlined_call_operand.hbm [shape: f32[32,32], index: 1, kind: input, shape index: {}]   ;;  %s317_s2 = inlined_call_operand.vmem [shape: f32[1,32], index: 2, kind: input, shape index: {}]   ;;  %s318_s3 = inlined_call_operand.hbm [shape: f32[8,32], index: 3, kind: output, shape index: {}]  }
   0x1   :  { %9 = vsyncpa [#allocation7], 0 }
   0x2   :  { %10 = vsyncpa [#allocation5], 0  ;;  %s268_s12 = smov [#allocation3]   ;;  %s269_s14 = smov [#allocation6]  }
   0x3   :  { %s17_s13 = sshll.u32 %s268_s12, 4  ;;  %s26_s15 = sshll.u32 %s269_s14, 4  ;;  %s18_s13 = int_to_ptr.vmem [resolvable:$true] %s17_s13  ;;  %s27_s15 = int_to_ptr.vmem [resolvable:$true] %s26_s15 }
   0x4   :  { %s210_s16 = scalar_lea.vmem %s18_s13, 128  ;;  %p215_p1 = scmp.lt.s32.totalorder %s18_s13, %s18_s13 }
   0x5   :  { %p211_p0 = scmp.ne.s32.totalorder %s18_s13, %s210_s16  ;;  %p216_p2 = scmp.lt.s32.totalorder %s210_s16, %s210_s16 }
   0x7   :  { %p217_p3 = por %p216_p2, %p215_p1 }
   0x9   :  { %p218_p4 = pnand %p217_p3, %p211_p0 }
   0xb   :  { %221 = shalt.err (!%p218_p4)
}
   0xc   :  { %20 = dma.hbm_to_vmem [thread:$0]  %s315_s0, 128, %s18_s13, [#allocation4]  }
   0xd   :  { %s230_s19 = scalar_lea.vmem %s27_s15, 512  ;;  %p235_p6 = scmp.lt.s32.totalorder %s27_s15, %s27_s15 }
   0xe   :  { %p231_p5 = scmp.ne.s32.totalorder %s27_s15, %s230_s19  ;;  %p236_p7 = scmp.lt.s32.totalorder %s230_s19, %s230_s19 }
  0x10   :  { %p237_p8 = por %p236_p7, %p235_p6 }
  0x12   :  { %p238_p9 = pnand %p237_p8, %p231_p5 }
  0x14   :  { %241 = shalt.err (!%p238_p9)
}
  0x15   :  { %s270_s20 = smov 128   ;;  %s271_s21 = smov 8  }
  0x16   :  { %32 = dma.hbm_to_vmem [thread:$0]  %s316_s1, 512, %s27_s15, [#allocation7], %s270_s20, %s270_s20, %s271_s21  }
  0x17   :  { %262 = dma.done.wait [#allocation4], 128  }
  0x18   :  { %263 = vsyncadd [#allocation4], 4294967168 }
  0x19   :  { %264 = dma.done.wait [#allocation7], 512  }
  0x1a   :  { %265 = vsyncadd [#allocation7], 4294966784  ;;  %vm45_vm0 = vcmask 261120   ;;  %v272_v0 = vmov 0.0   ;;  %vm273_vm1 = vmmov 0   ;;  %v52_v1 = vld [vmem:[#allocation6 + $0x18] sm:$0xff] }
  0x1b   :  { %182 = vmatprep.subr.mxu0 %v272_v0  ;;  %46 = vst.msk [vmem:[#allocation2] sm:$0xff] %vm45_vm0, %v272_v0  ;;  %190 = vmatprep.mubr.msk.f32.mxu0 %vm273_vm1, %v272_v0  ;;  %v51_v2 = vld [vmem:[#allocation6 + $0x10] sm:$0xff]  ;;  %v50_v3 = vld [vmem:[#allocation6 + $0x8] sm:$0xff]  ;;  %v49_v4 = vld [vmem:[#allocation6] sm:$0xff]  ;;  %s274_s24 = smov [#allocation8]  }
  0x1c   :  { %183 = vmatpush3.xpose.msk.msra.mxu0 %vm45_vm0, %v52_v1  ;;  %v48_v5 = vld [vmem:[#allocation3] sm:$0xff]  ;;  %v176_v10 = vld [vmem:[%s317_s2] ss:$0 sm:$0xff]  ;;  %s161_s25 = sshll.u32 %s274_s24, 4  ;;  %s162_s25 = int_to_ptr.vmem [resolvable:$true] %s161_s25 }
  0x1d   :  { %184 = vmatprep.subr.mxu0 %v272_v0  ;;  %s242_s26 = scalar_lea.vmem %s162_s25, 128  ;;  %p247_p11 = scmp.lt.s32.totalorder %s162_s25, %s162_s25 }
  0x1e   :  { %p243_p10 = scmp.ne.s32.totalorder %s162_s25, %s242_s26  ;;  %p248_p12 = scmp.lt.s32.totalorder %s242_s26, %s242_s26 }
  0x20   :  { %185 = vmatpush3.xpose.msk.msra.mxu0 %vm45_vm0, %v51_v2  ;;  %p249_p13 = por %p248_p12, %p247_p11 }
  0x21   :  { %186 = vmatprep.subr.mxu0 %v272_v0 }
  0x22   :  { %v47_v6 = vld [vmem:[#allocation2] sm:$0xff]  ;;  %p250_p0 = pnand %p249_p13, %p243_p10 }
  0x24   :  { %187 = vmatpush3.xpose.msk.msra.mxu0 %vm45_vm0, %v50_v3 }
  0x25   :  { %188 = vmatprep.subr.mxu0 %v272_v0 }
  0x28   :  { %189 = vmatpush3.xpose.msk.msra.mxu0 %vm45_vm0, %v49_v4 }
  0x2b   :  { %191 = vmatmul.mubr.msk.f32.vlgmr.msra.gmra.mxu0 %vm45_vm0, %v48_v5 }
  0xeb   :  { %v135_v7 = vpop.f32.mrf.mxu0 }
  0xec   :  { %v139_v8 = vadd.f32 %v135_v7, %v47_v6 }
  0xed   :  { %v192_v9 = vpop.f32.mrf.mxu0 }
  0xee   :  { %140 = vst.msk [vmem:[#allocation2] sm:$0xff] %vm45_vm0, %v139_v8 }
  0xf5   :  { %v144_v11 = vld [vmem:[#allocation2] sm:$0xff] }
  0xf6   :  { %v152_v12 = vadd.f32 %v176_v10, %v144_v11 }
  0xf8   :  { %200 = vtanh.f32 %v152_v12 }
 0x105   :  { %v201_v13 = vpop.eup %200 }
 0x106   :  { %154 = vst.msk [vmem:[#allocation8] sm:$0xff] %vm45_vm0, %v201_v13 }
 0x107   :  { %253 = shalt.err (!%p250_p0)
}
 0x108   :  { %164 = dma.vmem_to_hbm [thread:$0]  %s162_s25, 128, %s318_s3, [#allocation5]  }
 0x109   :  { %266 = dma.done.wait [#allocation5], 128  }
 0x10a   :  { %267 = vsyncadd [#allocation5], 4294967168 }
 0x10b   :  { %168 = vsyncpa [#allocation4], 1 }
 0x10c   :  { %169 = vsyncpa [#allocation7], 1 }
 0x10d   :  { %170 = vsyncpa [#allocation5], 1 }

</bundles_post_ra>
